<compile_context>
chip_gen: v6e
topology: v6e:2x2x1
jax: 0.10.0
libtpu: 0.0.40
codegen_flags: <defaults>
</compile_context>

<pallas_src>
import numpy as np
import jax
import jax.numpy as jnp
from jax.experimental import pallas as pl
from jax.experimental.pallas import tpu as pltpu

# ---------------- static configuration ----------------
BATCH = 2
F0 = 8          # input signal features (multiple of PoolCliqueToLine.signal_step == 8)
N_IN = 12       # clique nodes == incidence rows
N = 16          # line-graph nodes == incidence columns == GSO size
F1 = 16         # features after GraphFilter 1
F2 = 16         # features after GraphFilter 2
K1 = 3          # filter taps, layer 1
K2 = 3          # filter taps, layer 2
R1 = 32         # readout hidden
R2 = 4          # readout output
SIGNAL_STEP = 8


def localgnnline_kernel(x_ref, bblk_ref, sblk_ref,
                        w1_ref, b1_ref, w2_ref, b2_ref,
                        wr1_ref, br1_ref, wr2_ref, br2_ref,
                        out_ref):
    # x_ref   : (F0, BATCH*N_IN)        both batch elements stacked along lanes
    # bblk_ref: (BATCH*N_IN, BATCH*N)   block-diagonal incidence
    # sblk_ref: (BATCH*N,    BATCH*N)   block-diagonal GSO
    x = x_ref[...]
    Bblk = bblk_ref[...]
    Sblk = sblk_ref[...]

    # ---- PoolCliqueToLine: v[f, m] = max_n x[f, n] * B[n, m] ----
    # (torch: max over dim=2 of x[b, chunk, None] * B.T; zero products are included,
    #  and the cross-batch zeros of the block-diagonal B contribute the same 0 products.)
    prod = x[:, :, None] * Bblk[None, :, :]            # (F0, B*N_IN, B*N)
    v = jnp.max(prod, axis=1)                          # (F0, B*N) — single sublane reduce
    # PoolCliqueToLine only fills full chunks of `signal_step` features, leaving the
    # remainder at zero.  (F0 % 8 == 0 here, so this branch is statically dead.)
    if F0 % SIGNAL_STEP != 0:
        full = (F0 // SIGNAL_STEP) * SIGNAL_STEP
        row = jax.lax.broadcasted_iota(jnp.int32, v.shape, 0)
        v = jnp.where(row < full, v, 0.0)

    # ---- gml.GraphFilter / LSIGF with E = 1 edge feature ----
    # y[f, n] = sum_k W[:, k*G:(k+1)*G] @ (z S^k)[:, n] + bias[f]
    def graph_filter(z, W, bias, K, G):
        y = jnp.dot(W[:, 0:G], z, preferred_element_type=jnp.float32)
        zk = z
        for k in range(1, K):                           # static unroll (K = 3)
            zk = jnp.dot(zk, Sblk, preferred_element_type=jnp.float32)
            y = y + jnp.dot(W[:, k * G:(k + 1) * G], zk,
                            preferred_element_type=jnp.float32)
        return y + bias

    h = graph_filter(v, w1_ref[...], b1_ref[...], K1, F0)      # (F1, B*N)
    h = jnp.maximum(h, 0.0)                                     # sigma = ReLU
    # rho = NoPool -> identity (all nodes kept, alpha = 1)
    h = graph_filter(h, w2_ref[...], b2_ref[...], K2, F1)       # (F2, B*N)
    h = jnp.maximum(h, 0.0)

    # ---- Readout (kept in (feature, node) layout; no in-kernel transpose) ----
    r = jnp.dot(wr1_ref[...], h, preferred_element_type=jnp.float32) + br1_ref[...]
    r = jnp.maximum(r, 0.0)                                      # (R1, B*N)
    out_ref[...] = (jnp.dot(wr2_ref[...], r, preferred_element_type=jnp.float32)
                    + br2_ref[...])                              # (R2, B*N)


def _block_diag(M, reps):
    r, c = M.shape
    out = jnp.zeros((reps * r, reps * c), M.dtype)
    for i in range(reps):
        out = out.at[i * r:(i + 1) * r, i * c:(i + 1) * c].set(M)
    return out


@jax.jit
def localgnnline_forward(x, Bmat, S, W1, b1, W2, b2, Wr1, br1, Wr2, br2):
    batch = x.shape[0]

    # Fold batch onto the lane (node) axis; per-batch independence is preserved via
    # block-diagonal incidence / GSO.  (All layout plumbing stays outside the kernel.)
    x_stacked = jnp.transpose(x, (1, 0, 2)).reshape(F0, batch * N_IN)
    Bblk = _block_diag(Bmat, batch)        # (B*N_IN, B*N)
    Sblk = _block_diag(S, batch)           # (B*N,    B*N)

    vmem_spec = pl.BlockSpec(memory_space=pltpu.MemorySpace.VMEM)
    out_flat = pl.pallas_call(
        localgnnline_kernel,
        out_shape=jax.ShapeDtypeStruct((R2, batch * N), jnp.float32),
        in_specs=[vmem_spec] * 11,
        out_specs=vmem_spec,
    )(x_stacked, Bblk, Sblk, W1, b1, W2, b2, Wr1, br1, Wr2, br2)

    # (R2, B*N) -> (B, N, R2): pure layout fix-up in the wrapper.
    return jnp.transpose(out_flat.reshape(R2, batch, N), (1, 2, 0))


def reference_forward(x, Bmat, S, W1, b1, W2, b2, Wr1, br1, Wr2, br2):
    """Pure-JAX reference mirroring the PyTorch forward semantics."""
    # PoolCliqueToLine
    prod = x[:, :, :, None] * Bmat[None, None, :, :]    # (B, F0, N_IN, N)
    v = prod.max(axis=2)                                # (B, F0, N)

    def gf(z, Wf, bias, K):
        zs = [z]
        for _ in range(1, K):
            zs.append(jnp.einsum('bgn,nm->bgm', zs[-1], S))
        Z = jnp.concatenate(zs, axis=1)                 # (B, K*G, N)
        return jnp.einsum('fj,bjn->bfn', Wf, Z) + bias[None]

    h = jax.nn.relu(gf(v, W1, b1, K1))
    h = jax.nn.relu(gf(h, W2, b2, K2))
    yt = jnp.transpose(h, (0, 2, 1))                    # (B, N, F2)
    r = jax.nn.relu(yt @ Wr1.T + br1[:, 0])
    return r @ Wr2.T + br2[:, 0]                        # (B, N, R2)


if __name__ == "__main__":
    key = jax.random.PRNGKey(0)
    ks = jax.random.split(key, 10)

    x = jax.random.normal(ks[0], (BATCH, F0, N_IN), dtype=jnp.float32)

    # Deterministic incidence matrix: each line-graph node (edge) touches 2 clique nodes.
    Bnp = np.zeros((N_IN, N), dtype=np.float32)
    for m in range(N):
        Bnp[m % N_IN, m] = 1.0
        Bnp[(m + 5) % N_IN, m] = 1.0
    Bmat = jnp.asarray(Bnp)

    A = jax.random.uniform(ks[1], (N, N), dtype=jnp.float32)
    S = 0.1 * (A + A.T)                                 # symmetric GSO

    W1 = 0.1 * jax.random.normal(ks[2], (F1, K1 * F0), dtype=jnp.float32)
    b1 = 0.1 * jax.random.normal(ks[3], (F1, 1), dtype=jnp.float32)
    W2 = 0.1 * jax.random.normal(ks[4], (F2, K2 * F1), dtype=jnp.float32)
    b2 = 0.1 * jax.random.normal(ks[5], (F2, 1), dtype=jnp.float32)
    Wr1 = 0.1 * jax.random.normal(ks[6], (R1, F2), dtype=jnp.float32)   # Linear1 weight (torch layout)
    br1 = 0.1 * jax.random.normal(ks[7], (R1, 1), dtype=jnp.float32)
    Wr2 = 0.1 * jax.random.normal(ks[8], (R2, R1), dtype=jnp.float32)   # Linear2 weight (torch layout)
    br2 = 0.1 * jax.random.normal(ks[9], (R2, 1), dtype=jnp.float32)

    out = jax.block_until_ready(
        localgnnline_forward(x, Bmat, S, W1, b1, W2, b2, Wr1, br1, Wr2, br2))
    ref = jax.block_until_ready(
        reference_forward(x, Bmat, S, W1, b1, W2, b2, Wr1, br1, Wr2, br2))

    assert out.shape == (BATCH, N, R2), out.shape
    np.testing.assert_allclose(np.asarray(out), np.asarray(ref), rtol=2e-2, atol=2e-2)
    print("KERNEL_OK")
</pallas_src>

<mosaic_0001>
module attributes {stable_mosaic.version = 11 : i64} {
  func.func @localgnnline_kernel(%arg0: memref<8x24xf32, #tpu.memory_space<vmem>>, %arg1: memref<24x32xf32, #tpu.memory_space<vmem>>, %arg2: memref<32x32xf32, #tpu.memory_space<vmem>>, %arg3: memref<16x24xf32, #tpu.memory_space<vmem>>, %arg4: memref<16x1xf32, #tpu.memory_space<vmem>>, %arg5: memref<16x48xf32, #tpu.memory_space<vmem>>, %arg6: memref<16x1xf32, #tpu.memory_space<vmem>>, %arg7: memref<32x16xf32, #tpu.memory_space<vmem>>, %arg8: memref<32x1xf32, #tpu.memory_space<vmem>>, %arg9: memref<4x32xf32, #tpu.memory_space<vmem>>, %arg10: memref<4x1xf32, #tpu.memory_space<vmem>>, %arg11: memref<4x32xf32, #tpu.memory_space<vmem>>) attributes {dimension_semantics = [], scalar_prefetch = 0 : i64, scratch_operands = 0 : i64, tpu.core_type = #tpu.core_type<tc>} {
    %c0 = arith.constant 0 : index
    %c0_0 = arith.constant 0 : index
    %0 = vector.load %arg0[%c0, %c0_0] : memref<8x24xf32, #tpu.memory_space<vmem>>, vector<8x24xf32>
    %c0_1 = arith.constant 0 : index
    %c0_2 = arith.constant 0 : index
    %1 = vector.load %arg1[%c0_1, %c0_2] : memref<24x32xf32, #tpu.memory_space<vmem>>, vector<24x32xf32>
    %c0_3 = arith.constant 0 : index
    %c0_4 = arith.constant 0 : index
    %2 = vector.load %arg2[%c0_3, %c0_4] : memref<32x32xf32, #tpu.memory_space<vmem>>, vector<32x32xf32>
    %3 = vector.shape_cast %0 : vector<8x24xf32> to vector<8x24x1xf32>
    %4 = vector.shape_cast %1 : vector<24x32xf32> to vector<1x24x32xf32>
    %5 = vector.broadcast %3 : vector<8x24x1xf32> to vector<8x24x32xf32>
    %6 = vector.broadcast %4 : vector<1x24x32xf32> to vector<8x24x32xf32>
    %7 = arith.mulf %5, %6 : vector<8x24x32xf32>
    %cst = arith.constant dense<0xFF800000> : vector<8x32xf32>
    %8 = vector.multi_reduction <maximumf>, %7, %cst [1] : vector<8x24x32xf32> to vector<8x32xf32>
    %c0_5 = arith.constant 0 : index
    %c0_6 = arith.constant 0 : index
    %9 = vector.load %arg3[%c0_5, %c0_6] : memref<16x24xf32, #tpu.memory_space<vmem>>, vector<16x24xf32>
    %c0_7 = arith.constant 0 : index
    %c0_8 = arith.constant 0 : index
    %10 = vector.load %arg4[%c0_7, %c0_8] : memref<16x1xf32, #tpu.memory_space<vmem>>, vector<16x1xf32>
    %11 = vector.extract_strided_slice %9 {offsets = [0, 0], sizes = [16, 8], strides = [1, 1]} : vector<16x24xf32> to vector<16x8xf32>
    %cst_9 = arith.constant dense<0.000000e+00> : vector<16x32xf32>
    %12 = tpu.matmul %11, %8, %cst_9 {dimension_numbers = #tpu.dot_dimension_numbers<[1], [0], [0], [1], [0, 0, 1, 1], [], []>} : vector<16x8xf32>, vector<8x32xf32>, vector<16x32xf32> -> vector<16x32xf32>
    %cst_10 = arith.constant dense<0.000000e+00> : vector<8x32xf32>
    %13 = tpu.matmul %8, %2, %cst_10 {dimension_numbers = #tpu.dot_dimension_numbers<[1], [0], [0], [1], [0, 0, 1, 1], [], []>} : vector<8x32xf32>, vector<32x32xf32>, vector<8x32xf32> -> vector<8x32xf32>
    %14 = vector.extract_strided_slice %9 {offsets = [0, 8], sizes = [16, 8], strides = [1, 1]} : vector<16x24xf32> to vector<16x8xf32>
    %cst_11 = arith.constant dense<0.000000e+00> : vector<16x32xf32>
    %15 = tpu.matmul %14, %13, %cst_11 {dimension_numbers = #tpu.dot_dimension_numbers<[1], [0], [0], [1], [0, 0, 1, 1], [], []>} : vector<16x8xf32>, vector<8x32xf32>, vector<16x32xf32> -> vector<16x32xf32>
    %16 = arith.addf %12, %15 : vector<16x32xf32>
    %cst_12 = arith.constant dense<0.000000e+00> : vector<8x32xf32>
    %17 = tpu.matmul %13, %2, %cst_12 {dimension_numbers = #tpu.dot_dimension_numbers<[1], [0], [0], [1], [0, 0, 1, 1], [], []>} : vector<8x32xf32>, vector<32x32xf32>, vector<8x32xf32> -> vector<8x32xf32>
    %18 = vector.extract_strided_slice %9 {offsets = [0, 16], sizes = [16, 8], strides = [1, 1]} : vector<16x24xf32> to vector<16x8xf32>
    %cst_13 = arith.constant dense<0.000000e+00> : vector<16x32xf32>
    %19 = tpu.matmul %18, %17, %cst_13 {dimension_numbers = #tpu.dot_dimension_numbers<[1], [0], [0], [1], [0, 0, 1, 1], [], []>} : vector<16x8xf32>, vector<8x32xf32>, vector<16x32xf32> -> vector<16x32xf32>
    %20 = arith.addf %16, %19 : vector<16x32xf32>
    %21 = vector.broadcast %10 : vector<16x1xf32> to vector<16x32xf32>
    %22 = arith.addf %20, %21 : vector<16x32xf32>
    %cst_14 = arith.constant 0.000000e+00 : f32
    %23 = vector.broadcast %cst_14 : f32 to vector<16x32xf32>
    %24 = arith.maximumf %22, %23 : vector<16x32xf32>
    %c0_15 = arith.constant 0 : index
    %c0_16 = arith.constant 0 : index
    %25 = vector.load %arg5[%c0_15, %c0_16] : memref<16x48xf32, #tpu.memory_space<vmem>>, vector<16x48xf32>
    %c0_17 = arith.constant 0 : index
    %c0_18 = arith.constant 0 : index
    %26 = vector.load %arg6[%c0_17, %c0_18] : memref<16x1xf32, #tpu.memory_space<vmem>>, vector<16x1xf32>
    %27 = vector.extract_strided_slice %25 {offsets = [0, 0], sizes = [16, 16], strides = [1, 1]} : vector<16x48xf32> to vector<16x16xf32>
    %cst_19 = arith.constant dense<0.000000e+00> : vector<16x32xf32>
    %28 = tpu.matmul %27, %24, %cst_19 {dimension_numbers = #tpu.dot_dimension_numbers<[1], [0], [0], [1], [0, 0, 1, 1], [], []>} : vector<16x16xf32>, vector<16x32xf32>, vector<16x32xf32> -> vector<16x32xf32>
    %cst_20 = arith.constant dense<0.000000e+00> : vector<16x32xf32>
    %29 = tpu.matmul %24, %2, %cst_20 {dimension_numbers = #tpu.dot_dimension_numbers<[1], [0], [0], [1], [0, 0, 1, 1], [], []>} : vector<16x32xf32>, vector<32x32xf32>, vector<16x32xf32> -> vector<16x32xf32>
    %30 = vector.extract_strided_slice %25 {offsets = [0, 16], sizes = [16, 16], strides = [1, 1]} : vector<16x48xf32> to vector<16x16xf32>
    %cst_21 = arith.constant dense<0.000000e+00> : vector<16x32xf32>
    %31 = tpu.matmul %30, %29, %cst_21 {dimension_numbers = #tpu.dot_dimension_numbers<[1], [0], [0], [1], [0, 0, 1, 1], [], []>} : vector<16x16xf32>, vector<16x32xf32>, vector<16x32xf32> -> vector<16x32xf32>
    %32 = arith.addf %28, %31 : vector<16x32xf32>
    %cst_22 = arith.constant dense<0.000000e+00> : vector<16x32xf32>
    %33 = tpu.matmul %29, %2, %cst_22 {dimension_numbers = #tpu.dot_dimension_numbers<[1], [0], [0], [1], [0, 0, 1, 1], [], []>} : vector<16x32xf32>, vector<32x32xf32>, vector<16x32xf32> -> vector<16x32xf32>
    %34 = vector.extract_strided_slice %25 {offsets = [0, 32], sizes = [16, 16], strides = [1, 1]} : vector<16x48xf32> to vector<16x16xf32>
    %cst_23 = arith.constant dense<0.000000e+00> : vector<16x32xf32>
    %35 = tpu.matmul %34, %33, %cst_23 {dimension_numbers = #tpu.dot_dimension_numbers<[1], [0], [0], [1], [0, 0, 1, 1], [], []>} : vector<16x16xf32>, vector<16x32xf32>, vector<16x32xf32> -> vector<16x32xf32>
    %36 = arith.addf %32, %35 : vector<16x32xf32>
    %37 = vector.broadcast %26 : vector<16x1xf32> to vector<16x32xf32>
    %38 = arith.addf %36, %37 : vector<16x32xf32>
    %cst_24 = arith.constant 0.000000e+00 : f32
    %39 = vector.broadcast %cst_24 : f32 to vector<16x32xf32>
    %40 = arith.maximumf %38, %39 : vector<16x32xf32>
    %c0_25 = arith.constant 0 : index
    %c0_26 = arith.constant 0 : index
    %41 = vector.load %arg7[%c0_25, %c0_26] : memref<32x16xf32, #tpu.memory_space<vmem>>, vector<32x16xf32>
    %cst_27 = arith.constant dense<0.000000e+00> : vector<32x32xf32>
    %42 = tpu.matmul %41, %40, %cst_27 {dimension_numbers = #tpu.dot_dimension_numbers<[1], [0], [0], [1], [0, 0, 1, 1], [], []>} : vector<32x16xf32>, vector<16x32xf32>, vector<32x32xf32> -> vector<32x32xf32>
    %c0_28 = arith.constant 0 : index
    %c0_29 = arith.constant 0 : index
    %43 = vector.load %arg8[%c0_28, %c0_29] : memref<32x1xf32, #tpu.memory_space<vmem>>, vector<32x1xf32>
    %44 = vector.broadcast %43 : vector<32x1xf32> to vector<32x32xf32>
    %45 = arith.addf %42, %44 : vector<32x32xf32>
    %cst_30 = arith.constant 0.000000e+00 : f32
    %46 = vector.broadcast %cst_30 : f32 to vector<32x32xf32>
    %47 = arith.maximumf %45, %46 : vector<32x32xf32>
    %c0_31 = arith.constant 0 : index
    %c0_32 = arith.constant 0 : index
    %48 = vector.load %arg9[%c0_31, %c0_32] : memref<4x32xf32, #tpu.memory_space<vmem>>, vector<4x32xf32>
    %cst_33 = arith.constant dense<0.000000e+00> : vector<4x32xf32>
    %49 = tpu.matmul %48, %47, %cst_33 {dimension_numbers = #tpu.dot_dimension_numbers<[1], [0], [0], [1], [0, 0, 1, 1], [], []>} : vector<4x32xf32>, vector<32x32xf32>, vector<4x32xf32> -> vector<4x32xf32>
    %c0_34 = arith.constant 0 : index
    %c0_35 = arith.constant 0 : index
    %50 = vector.load %arg10[%c0_34, %c0_35] : memref<4x1xf32, #tpu.memory_space<vmem>>, vector<4x1xf32>
    %51 = vector.broadcast %50 : vector<4x1xf32> to vector<4x32xf32>
    %52 = arith.addf %49, %51 : vector<4x32xf32>
    %c0_36 = arith.constant 0 : index
    %c0_37 = arith.constant 0 : index
    %53 = vector.load %arg11[%c0_36, %c0_37] : memref<4x32xf32, #tpu.memory_space<vmem>>, vector<4x32xf32>
    tpu.vector_store %arg11[%c0_36, %c0_37], %52 {strides = array<i32>} : memref<4x32xf32, #tpu.memory_space<vmem>>, vector<4x32xf32>,
    return
  }
}

</mosaic_0001>

<bundles_post_ra>
// kernel: localgnnline_forward.1
= control target key start
LH: loop header
LB: loop body
LE: loop exit
PB: predicated region body
PF: predicated region fallthrough
CT: control target
= control target key end

     0   :  { %v46_v0 = vlaneseq  ;;  %v1546_v19 = vmov 0.0   ;;  %vm1547_vm0 = vmmov 0   ;;  %s1548_s30 = smov 120   ;;  %vm190_vm1 = vcmask 261120   ;;  %s1551_s23 = smov 96   ;;  %s1844_s0 = inlined_call_operand.vmem [shape: f32[8,24], index: 0, kind: input, shape index: {}]   ;;  %s1845_s2 = inlined_call_operand.vmem [shape: f32[32,32], index: 2, kind: input, shape index: {}]   ;;  %s1846_s3 = inlined_call_operand.vmem [shape: f32[16,24], index: 3, kind: input, shape index: {}]   ;;  %s1847_s1 = inlined_call_operand.vmem [shape: f32[24,32], index: 1, kind: input, shape index: {}]   ;;  %s1848_s4 = inlined_call_operand.vmem [shape: f32[16,1], index: 4, kind: input, shape index: {}]   ;;  %s1849_s5 = inlined_call_operand.vmem [shape: f32[16,48], index: 5, kind: input, shape index: {}]   ;;  %s1850_s6 = inlined_call_operand.vmem [shape: f32[16,1], index: 6, kind: input, shape index: {}]   ;;  %s1851_s8 = inlined_call_operand.vmem [shape: f32[32,1], index: 8, kind: input, shape index: {}]   ;;  %s1852_s10 = inlined_call_operand.vmem [shape: f32[4,1], index: 10, kind: input, shape index: {}]   ;;  %s1853_s7 = inlined_call_operand.vmem [shape: f32[32,16], index: 7, kind: input, shape index: {}]   ;;  %s1854_s9 = inlined_call_operand.vmem [shape: f32[4,32], index: 9, kind: input, shape index: {}]   ;;  %s1855_s11 = inlined_call_operand.vmem [shape: f32[4,32], index: 11, kind: output, shape index: {}]  }
   0x1   :  { %v38_v2 = vld [vmem:[%s1844_s0] sm:$0xff]  ;;  %1437 = vmatprep.subr.mxu0 %v1546_v19  ;;  %v1619_v20 = vld [vmem:[%s1845_s2 + $0x18] sm:$0xff]  ;;  %v1625_v21 = vld [vmem:[%s1845_s2 + $0x10] sm:$0xff]  ;;  %1445 = vmatprep.mubr.msk.f32.mxu0 %vm1547_vm0, %v1546_v19  ;;  %vm291_vm2 = vcmask 1041409   ;;  %vm293_vm3 = vcmask 1042434   ;;  %vm295_vm4 = vcmask 1043459  }
   0x2   :  { %v47_v1 = vshrl.u32 %v46_v0, 7  ;;  %1438 = vmatpush3.msra.mxu0 %v1619_v20  ;;  %v1631_v22 = vld [vmem:[%s1845_s2 + $0x8] sm:$0xff]  ;;  %v1640_v23 = vld [vmem:[%s1845_s2] sm:$0xff]  ;;  %v1670_v38 = vld [vmem:[%s1847_s1 + $0x10] sm:$0xff]  ;;  %vm297_vm5 = vcmask 1044484   ;;  %vm299_vm6 = vcmask 1045509  }
   0x3   :  { %1439 = vmatprep.subr.mxu0 %v1546_v19  ;;  %v1648_v24 = vld [vmem:[%s1846_s3] sm:$0xff]  ;;  %v1653_v25 = vld [vmem:[%s1846_s3 + $0x8] sm:$0xff]  ;;  %vm301_vm7 = vcmask 1046534   ;;  %vm303_vm8 = vcmask 1047559   ;;  %vm383_vm9 = vcmask 64512   ;;  %vm806_vm10 = vcmask 130048  }
   0x4   :  { %v63_v3 = vsub.s32 1, %v47_v1  ;;  %v48_v4 = vsub.s32 0, %v47_v1  ;;  %v78_v7 = vsub.s32 2, %v47_v1  ;;  %v93_v9 = vsub.s32 3, %v47_v1  ;;  %1440 = vmatpush3.msra.mxu0 %v1625_v21  ;;  %v1660_v34 = vld [vmem:[%s1847_s1 + $0x8] sm:$0xff]  ;;  %v1665_v37 = vld [vmem:[%s1847_s1] sm:$0xff] }
   0x5   :  { %v108_v11 = vsub.s32 4, %v47_v1  ;;  %v123_v13 = vsub.s32 5, %v47_v1  ;;  %v138_v15 = vsub.s32 6, %v47_v1  ;;  %v153_v17 = vsub.s32 7, %v47_v1  ;;  %1441 = vmatprep.subr.mxu0 %v1546_v19  ;;  %s1549_s1 = smov 112  }
   0x6   :  { %v64_v5 = vrot.slane %v38_v2, %v63_v3  ;;  %v49_v6 = vrot.slane %v38_v2, %v48_v4  ;;  %v79_v8 = vrot.slane %v38_v2, %v78_v7  ;;  %v94_v10 = vrot.slane %v38_v2, %v93_v9  ;;  %1442 = vmatpush3.msra.mxu0 %v1631_v22 }
   0x7   :  { %v109_v12 = vrot.slane %v38_v2, %v108_v11  ;;  %v124_v14 = vrot.slane %v38_v2, %v123_v13  ;;  %v139_v16 = vrot.slane %v38_v2, %v138_v15  ;;  %v154_v18 = vrot.slane %v38_v2, %v153_v17  ;;  %1443 = vmatprep.subr.mxu0 %v1546_v19 }
   0x8   :  { %66 = vbcast.lane.b32.xlu1 %v64_v5, 256  ;;  %51 = vbcast.lane.b32.xlu0 %v49_v6, 256  ;;  %vm1354_vm11 = vcmask 257024  }
   0x9   :  { %1444 = vmatpush3.msra.mxu0 %v1640_v23 }
   0xc   :  { %70 = vbcast.lane.b32.xlu1 %v64_v5, 264  ;;  %55 = vbcast.lane.b32.xlu0 %v49_v6, 264 }
  0x10   :  { %85 = vbcast.lane.b32.xlu1 %v79_v8, 264  ;;  %81 = vbcast.lane.b32.xlu0 %v79_v8, 256 }
  0x14   :  { %74 = vbcast.lane.b32.xlu1 %v64_v5, 272  ;;  %59 = vbcast.lane.b32.xlu0 %v49_v6, 272 }
  0x18   :  { %100 = vbcast.lane.b32.xlu1 %v94_v10, 264  ;;  %96 = vbcast.lane.b32.xlu0 %v94_v10, 256 }
  0x1c   :  { %111 = vbcast.lane.b32.xlu1 %v109_v12, 256  ;;  %89 = vbcast.lane.b32.xlu0 %v79_v8, 272 }
  0x20   :  { %104 = vbcast.lane.b32.xlu1 %v94_v10, 272  ;;  %115 = vbcast.lane.b32.xlu0 %v109_v12, 264 }
  0x24   :  { %130 = vbcast.lane.b32.xlu1 %v124_v14, 264  ;;  %126 = vbcast.lane.b32.xlu0 %v124_v14, 256 }
  0x28   :  { %141 = vbcast.lane.b32.xlu1 %v139_v16, 256  ;;  %119 = vbcast.lane.b32.xlu0 %v109_v12, 272 }
  0x2c   :  { %134 = vbcast.lane.b32.xlu1 %v124_v14, 272  ;;  %145 = vbcast.lane.b32.xlu0 %v139_v16, 264 }
  0x30   :  { %160 = vbcast.lane.b32.xlu1 %v154_v18, 264  ;;  %156 = vbcast.lane.b32.xlu0 %v154_v18, 256 }
  0x34   :  { %164 = vbcast.lane.b32.xlu1 %v154_v18, 272  ;;  %149 = vbcast.lane.b32.xlu0 %v139_v16, 272 }
  0x38   :  { %379 = vrot.lane.b32.xlu0 %v1648_v24, %s1548_s30  ;;  %381 = vrot.lane.b32.xlu1 %v1653_v25, %s1548_s30 }
  0x3c   :  { %616 = vrot.lane.b32.xlu0 %v1648_v24, %s1549_s1  ;;  %618 = vrot.lane.b32.xlu1 %v1653_v25, %s1549_s1 }
  0x7a   :  { %v67_v26 = vpop.permute.xlu1 %66  ;;  %v52_v27 = vpop.permute.xlu0 %51 }
  0x7b   :  { %v169_v40 = vmul.f32 %v67_v26, %v1665_v37  ;;  %v166_v41 = vmul.f32 %v52_v27, %v1665_v37 }
  0x7d   :  { %v202_v53 = vsel %vm190_vm1, %v169_v40, -inf  ;;  %v191_v54 = vsel %vm190_vm1, %v166_v41, -inf }
  0x7e   :  { %v71_v28 = vpop.permute.xlu1 %70  ;;  %v56_v29 = vpop.permute.xlu0 %55 }
  0x7f   :  { %v170_v39 = vmul.f32 %v71_v28, %v1660_v34  ;;  %v167_v42 = vmul.f32 %v56_v29, %v1660_v34 }
  0x81   :  { %v203_v51 = vsel %vm190_vm1, %v170_v39, -inf  ;;  %v192_v55 = vsel %vm190_vm1, %v167_v42, -inf }
  0x82   :  { %v86_v30 = vpop.permute.xlu1 %85  ;;  %v82_v31 = vpop.permute.xlu0 %81  ;;  %v204_v62 = vmax.f32 %v202_v53, %v203_v51  ;;  %v193_v2 = vmax.f32 %v191_v54, %v192_v55 }
  0x83   :  { %v173_v45 = vmul.f32 %v86_v30, %v1660_v34  ;;  %v172_v46 = vmul.f32 %v82_v31, %v1665_v37 }
  0x85   :  { %v214_v58 = vsel %vm190_vm1, %v173_v45, -inf  ;;  %v213_v59 = vsel %vm190_vm1, %v172_v46, -inf }
  0x86   :  { %v75_v32 = vpop.permute.xlu1 %74  ;;  %v60_v33 = vpop.permute.xlu0 %59  ;;  %v215_v5 = vmax.f32 %v213_v59, %v214_v58 }
  0x87   :  { %v171_v47 = vmul.f32 %v75_v32, %v1670_v38  ;;  %v168_v48 = vmul.f32 %v60_v33, %v1670_v38 }
  0x89   :  { %v205_v60 = vsel %vm190_vm1, %v171_v47, -inf  ;;  %v194_v63 = vsel %vm190_vm1, %v168_v48, -inf }
  0x8a   :  { %v101_v35 = vpop.permute.xlu1 %100  ;;  %v97_v36 = vpop.permute.xlu0 %96  ;;  %v206_v6 = vmax.f32 %v204_v62, %v205_v60  ;;  %v195_v10 = vmax.f32 %v193_v2, %v194_v63 }
  0x8b   :  { %v176_v49 = vmul.f32 %v101_v35, %v1660_v34  ;;  %v175_v50 = vmul.f32 %v97_v36, %v1665_v37 }
  0x8c   :  { %v207_v18 = vrot.slane %v206_v6, 4  ;;  %v196_v28 = vrot.slane %v195_v10, 4 }
  0x8d   :  { %v225_v0 = vsel %vm190_vm1, %v176_v49, -inf  ;;  %v224_v1 = vsel %vm190_vm1, %v175_v50, -inf }
  0x8e   :  { %v112_v43 = vpop.permute.xlu1 %111  ;;  %v90_v44 = vpop.permute.xlu0 %89  ;;  %v226_v11 = vmax.f32 %v224_v1, %v225_v0  ;;  %v208_v40 = vmax.f32 %v206_v6, %v207_v18 }
  0x8f   :  { %v174_v52 = vmul.f32 %v90_v44, %v1670_v38  ;;  %v178_v12 = vmul.f32 %v112_v43, %v1665_v37  ;;  %v197_v44 = vmax.f32 %v195_v10, %v196_v28 }
  0x91   :  { %v216_v3 = vsel %vm190_vm1, %v174_v52, -inf  ;;  %v235_v29 = vsel %vm190_vm1, %v178_v12, -inf  ;;  %v209_v52 = vrot.slane %v208_v40, 2 }
  0x92   :  { %v105_v56 = vpop.permute.xlu1 %104  ;;  %v116_v57 = vpop.permute.xlu0 %115  ;;  %v217_v13 = vmax.f32 %v215_v5, %v216_v3 }
  0x93   :  { %v177_v61 = vmul.f32 %v105_v56, %v1670_v38  ;;  %v179_v4 = vmul.f32 %v116_v57, %v1660_v34  ;;  %v198_v57 = vrot.slane %v197_v44, 2  ;;  %v210_v3 = vmax.f32 %v208_v40, %v209_v52 }
  0x94   :  { %v218_v31 = vrot.slane %v217_v13, 4 }
  0x95   :  { %v227_v7 = vsel %vm190_vm1, %v177_v61, -inf  ;;  %v236_v15 = vsel %vm190_vm1, %v179_v4, -inf }
  0x96   :  { %v131_v8 = vpop.permute.xlu1 %130  ;;  %v127_v9 = vpop.permute.xlu0 %126  ;;  %v228_v14 = vmax.f32 %v226_v11, %v227_v7  ;;  %v237_v32 = vmax.f32 %v235_v29, %v236_v15  ;;  %v219_v46 = vmax.f32 %v217_v13, %v218_v31 }
  0x97   :  { %v182_v16 = vmul.f32 %v131_v8, %v1660_v34  ;;  %v181_v17 = vmul.f32 %v127_v9, %v1665_v37  ;;  %v199_v8 = vmax.f32 %v197_v44, %v198_v57 }
  0x98   :  { %v229_v33 = vrot.slane %v228_v14, 4  ;;  %v220_v61 = vrot.slane %v219_v46, 2 }
  0x99   :  { %v247_v35 = vsel %vm190_vm1, %v182_v16, -inf  ;;  %v246_v36 = vsel %vm190_vm1, %v181_v17, -inf  ;;  %v200_v28 = vrot.slane %v199_v8, 1 }
  0x9a   :  { %v142_v26 = vpop.permute.xlu1 %141  ;;  %v120_v27 = vpop.permute.xlu0 %119  ;;  %v248_v47 = vmax.f32 %v246_v36, %v247_v35  ;;  %v230_v49 = vmax.f32 %v228_v14, %v229_v33  ;;  %v221_v10 = vmax.f32 %v219_v46, %v220_v61 }
  0x9b   :  { %v180_v30 = vmul.f32 %v120_v27, %v1670_v38  ;;  %v184_v58 = vmul.f32 %v142_v26, %v1665_v37  ;;  %v211_v27 = vrot.slane %v210_v3, 1  ;;  %v201_v40 = vmax.f32 %v199_v8, %v200_v28  ;;  %v1151_v8 = vld [vmem:[%s1851_s8 + $0x10] sm:$0xff] }
  0x9c   :  { %v231_v63 = vrot.slane %v230_v49, 2 }
  0x9d   :  { %v238_v39 = vsel %vm190_vm1, %v180_v30, -inf  ;;  %v257_v9 = vsel %vm190_vm1, %v184_v58, -inf  ;;  %v222_v30 = vrot.slane %v221_v10, 1 }
  0x9e   :  { %v239_v41 = vmax.f32 %v237_v32, %v238_v39  ;;  %v135_v42 = vpop.permute.xlu1 %134  ;;  %v146_v43 = vpop.permute.xlu0 %145  ;;  %v232_v14 = vmax.f32 %v230_v49, %v231_v63  ;;  %v212_v39 = vmax.f32 %v210_v3, %v211_v27  ;;  %v1752_v3 = vld [vmem:[%s1849_s5] sm:$0xff] }
  0x9f   :  { %v183_v45 = vmul.f32 %v135_v42, %v1670_v38  ;;  %v185_v51 = vmul.f32 %v146_v43, %v1660_v34  ;;  %v223_v42 = vmax.f32 %v221_v10, %v222_v30 }
  0xa0   :  { %v240_v48 = vrot.slane %v239_v41, 4  ;;  %v233_v33 = vrot.slane %v232_v14, 1  ;;  %v292_v49 = vsel %vm291_vm2, %v212_v39, %v201_v40 }
  0xa1   :  { %v249_v50 = vsel %vm190_vm1, %v183_v45, -inf  ;;  %v258_v0 = vsel %vm190_vm1, %v185_v51, -inf  ;;  %v294_v51 = vsel %vm293_vm3, %v223_v42, %v292_v49  ;;  %v1145_v42 = vld [vmem:[%s1853_s7] sm:$0xff] }
  0xa2   :  { %v241_v53 = vmax.f32 %v239_v41, %v240_v48  ;;  %v250_v54 = vmax.f32 %v248_v47, %v249_v50  ;;  %v161_v55 = vpop.permute.xlu1 %160  ;;  %v157_v56 = vpop.permute.xlu0 %156  ;;  %v259_v12 = vmax.f32 %v257_v9, %v258_v0  ;;  %v234_v45 = vmax.f32 %v232_v14, %v233_v33  ;;  %v1150_v9 = vld [vmem:[%s1851_s8 + $0x8] sm:$0xff] }
  0xa3   :  { %v188_v59 = vmul.f32 %v161_v55, %v1660_v34  ;;  %v187_v60 = vmul.f32 %v157_v56, %v1665_v37 }
  0xa4   :  { %v251_v62 = vrot.slane %v250_v54, 4  ;;  %v242_v4 = vrot.slane %v241_v53, 2 }
  0xa5   :  { %v269_v1 = vsel %vm190_vm1, %v188_v59, -inf  ;;  %v268_v2 = vsel %vm190_vm1, %v187_v60, -inf }
  0xa6   :  { %v252_v5 = vmax.f32 %v250_v54, %v251_v62  ;;  %v165_v6 = vpop.permute.xlu1 %164  ;;  %v150_v7 = vpop.permute.xlu0 %149  ;;  %v270_v13 = vmax.f32 %v268_v2, %v269_v1  ;;  %v243_v17 = vmax.f32 %v241_v53, %v242_v4  ;;  %v296_v54 = vsel %vm295_vm4, %v234_v45, %v294_v51  ;;  %v282_v1 = vld [vmem:[%s1848_s4 + $0x8] sm:$0xff]  ;;  %v281_v2 = vld [vmem:[%s1848_s4] sm:$0xff] }
  0xa7   :  { %v189_v34 = vmul.f32 %v165_v6, %v1670_v38  ;;  %v186_v37 = vmul.f32 %v150_v7, %v1670_v38  ;;  %v1757_v4 = vld [vmem:[%s1849_s5 + $0x8] sm:$0xff]  ;;  %v717_v6 = vld [vmem:[%s1850_s6] sm:$0xff]  ;;  %v1152_v7 = vld [vmem:[%s1851_s8 + $0x18] sm:$0xff] }
  0xa8   :  { %v253_v11 = vrot.slane %v252_v5, 2  ;;  %v244_v38 = vrot.slane %v243_v17, 1 }
  0xa9   :  { %v271_v15 = vsel %vm190_vm1, %v189_v34, -inf  ;;  %v260_v16 = vsel %vm190_vm1, %v186_v37, -inf  ;;  %v1149_v34 = vld [vmem:[%s1851_s8] sm:$0xff] }
  0xaa   :  { %v272_v18 = vmax.f32 %v270_v13, %v271_v15  ;;  %v261_v26 = vmax.f32 %v259_v12, %v260_v16  ;;  %v254_v29 = vmax.f32 %v252_v5, %v253_v11  ;;  %v245_v46 = vmax.f32 %v243_v17, %v244_v38  ;;  %v380_v61 = vpop.permute.xlu0 %379  ;;  %v382_v63 = vpop.permute.xlu1 %381  ;;  %v718_v5 = vld [vmem:[%s1850_s6 + $0x8] sm:$0xff]  ;;  %v1275_v37 = vld [vmem:[%s1852_s10] sm:$0xf] }
  0xab   :  { %1450 = vmatprep.mubr.msk.f32.mxu1 %vm383_vm9, %v380_v61  ;;  %v1148_v61 = vld [vmem:[%s1853_s7 + $0x18] sm:$0xff] }
  0xac   :  { %v273_v31 = vrot.slane %v272_v18, 4  ;;  %v262_v32 = vrot.slane %v261_v26, 4  ;;  %v255_v41 = vrot.slane %v254_v29, 1  ;;  %v298_v57 = vsel %vm297_vm5, %v245_v46, %v296_v54 }
  0xae   :  { %v274_v35 = vmax.f32 %v272_v18, %v273_v31  ;;  %v263_v36 = vmax.f32 %v261_v26, %v262_v32  ;;  %v256_v50 = vmax.f32 %v254_v29, %v255_v41  ;;  %v619_v17 = vpop.permute.xlu1 %618 }
  0xb0   :  { %v275_v43 = vrot.slane %v274_v35, 2  ;;  %v264_v44 = vrot.slane %v263_v36, 2  ;;  %v300_v58 = vsel %vm299_vm6, %v256_v50, %v298_v57 }
  0xb2   :  { %v276_v47 = vmax.f32 %v274_v35, %v275_v43  ;;  %v265_v48 = vmax.f32 %v263_v36, %v264_v44 }
  0xb4   :  { %v277_v52 = vrot.slane %v276_v47, 1  ;;  %v266_v53 = vrot.slane %v265_v48, 1 }
  0xb6   :  { %v267_v55 = vmax.f32 %v265_v48, %v266_v53  ;;  %v278_v56 = vmax.f32 %v276_v47, %v277_v52 }
  0xb8   :  { %v302_v59 = vsel %vm301_vm7, %v267_v55, %v300_v58 }
  0xb9   :  { %v304_v60 = vsel %vm303_vm8, %v278_v56, %v302_v59  ;;  %v1146_v59 = vld [vmem:[%s1853_s7 + $0x8] sm:$0xff] }
  0xba   :  { %1446 = vmatmul.mubr.msk.f32.vlgmr.msra.gmra.mxu0 %vm190_vm1, %v304_v60 }
 0x17a   :  { %v373_v62 = vpop.f32.mrf.mxu0 }
 0x17b   :  { %1448 = vmatprep.subr.mxu1 %v373_v62 }
 0x17c   :  { %v1447_v0 = vpop.f32.mrf.mxu0  ;;  %1449 = vmatpush3.msra.mxu1 %v373_v62 }
 0x17d   :  { %1451 = vmatmul.mubr.msk.f32.vlgmr.msra.gmra.mxu1 %vm383_vm9, %v382_v63  ;;  %1453 = vmatprep.subr.mxu1 %v304_v60 }
 0x17e   :  { %1454 = vmatpush3.msra.mxu1 %v304_v60  ;;  %1455 = vmatprep.mubr.msk.f32.mxu1 %vm383_vm9, %v1648_v24  ;;  %v617_v24 = vpop.permute.xlu0 %616  ;;  %v1147_v60 = vld [vmem:[%s1853_s7 + $0x10] sm:$0xff] }
 0x17f   :  { %1458 = vmatprep.subr.mxu1 %v1546_v19  ;;  %1471 = vmatprep.mubr.msk.f32.mxu0 %vm383_vm9, %v617_v24 }
 0x181   :  { %1456 = vmatmul.mubr.msk.f32.vlgmr.msra.gmra.mxu1 %vm383_vm9, %v1653_v25  ;;  %v1550_v25 = vmov 0  }
 0x182   :  { %1459 = vmatpush3.msra.mxu1 %v1619_v20  ;;  %1466 = vmatprep.mubr.msk.f32.mxu1 %vm1547_vm0, %v1546_v19 }
 0x183   :  { %1460 = vmatprep.subr.mxu1 %v1546_v19  ;;  %1545 = vset.pattern.permute.xlu1 %v1550_v25 }
 0x184   :  { %1461 = vmatpush3.msra.mxu1 %v1625_v21  ;;  %1544 = vset.pattern.permute.xlu0 %v1550_v25 }
 0x185   :  { %1462 = vmatprep.subr.mxu1 %v1546_v19  ;;  %708 = vperm.xlu1 %1545, %v282_v1  }
 0x186   :  { %1463 = vmatpush3.msra.mxu1 %v1631_v22  ;;  %703 = vperm.xlu0 %1544, %v281_v2  }
 0x187   :  { %1464 = vmatprep.subr.mxu1 %v1546_v19 }
 0x188   :  { %1465 = vmatpush3.msra.mxu1 %v1640_v23 }
 0x189   :  { %1467 = vmatmul.mubr.msk.f32.vlgmr.msra.gmra.mxu1 %vm190_vm1, %v373_v62  ;;  %802 = vrot.lane.b32.xlu1 %v1752_v3, %s1549_s1 }
 0x18a   :  { %804 = vrot.lane.b32.xlu0 %v1757_v4, %s1549_s1 }
 0x18d   :  { %1046 = vrot.lane.b32.xlu1 %v1752_v3, %s1551_s23 }
 0x18e   :  { %1048 = vrot.lane.b32.xlu0 %v1757_v4, %s1551_s23 }
 0x191   :  { %1138 = vperm.xlu1 %1545, %v718_v5  }
 0x192   :  { %1133 = vperm.xlu0 %1544, %v717_v6  }
 0x195   :  { %1170 = vperm.xlu1 %1545, %v1152_v7  }
 0x196   :  { %1165 = vperm.xlu0 %1544, %v1151_v8  }
 0x199   :  { %1160 = vperm.xlu1 %1545, %v1150_v9  }
 0x19a   :  { %1155 = vperm.xlu0 %1544, %v1149_v34  }
 0x19d   :  { %1278 = vperm.xlu1 %1545, %v1275_v37  }
 0x200   :  { %v709_v29 = vpop.permute.xlu1 %708 }
 0x201   :  { %v704_v31 = vpop.permute.xlu0 %703 }
 0x204   :  { %v803_v36 = vpop.permute.xlu1 %802 }
 0x205   :  { %1489 = vmatprep.mubr.msk.f32.mxu1 %vm806_vm10, %v803_v36 }
 0x23d   :  { %v1452_v10 = vpop.f32.mrf.mxu1 }
 0x23f   :  { %v454_v11 = vpop.f32.mrf.mxu1 }
 0x241   :  { %v1457_v12 = vpop.f32.mrf.mxu1 }
 0x242   :  { %v540_v13 = vadd.f32 %v1457_v12, %v1452_v10  ;;  %v1274_v10 = vld [vmem:[%s1854_s9] sm:$0xf] }
 0x243   :  { %v534_v14 = vpop.f32.mrf.mxu1 }
 0x244   :  { %v535_v15 = vadd.f32 %v534_v14, %v454_v11 }
 0x249   :  { %v612_v16 = vpop.f32.mrf.mxu1 }
 0x24a   :  { %1469 = vmatprep.subr.mxu0 %v612_v16 }
 0x24b   :  { %v1468_v18 = vpop.f32.mrf.mxu1  ;;  %1470 = vmatpush3.msra.mxu0 %v612_v16 }
 0x24c   :  { %1472 = vmatmul.mubr.msk.f32.vlgmr.msra.gmra.mxu0 %vm383_vm9, %v619_v17  ;;  %1474 = vmatprep.subr.mxu0 %v1619_v20 }
 0x24d   :  { %1475 = vmatpush3.msra.mxu0 %v1619_v20 }
 0x24e   :  { %1476 = vmatprep.subr.mxu0 %v1625_v21 }
 0x24f   :  { %1477 = vmatpush3.msra.mxu0 %v1625_v21 }
 0x250   :  { %1478 = vmatprep.subr.mxu0 %v1631_v22 }
 0x251   :  { %1479 = vmatpush3.msra.mxu0 %v1631_v22 }
 0x252   :  { %1480 = vmatprep.subr.mxu0 %v1640_v23 }
 0x253   :  { %1481 = vmatpush3.msra.mxu0 %v1640_v23 }
 0x254   :  { %1499 = vmatprep.subr.mxu0 %v1619_v20 }
 0x30c   :  { %v1473_v26 = vpop.f32.mrf.mxu0 }
 0x30d   :  { %v700_v27 = vadd.f32 %v1473_v26, %v540_v13 }
 0x30e   :  { %v690_v28 = vpop.f32.mrf.mxu0 }
 0x30f   :  { %v699_v30 = vadd.f32 %v690_v28, %v535_v15  ;;  %v712_v32 = vadd.f32 %v709_v29, %v700_v27 }
 0x311   :  { %v711_v33 = vadd.f32 %v704_v31, %v699_v30  ;;  %v714_v35 = vmax.f32 %v712_v32, 0.0 }
 0x313   :  { %v713_v38 = vmax.f32 %v711_v33, 0.0 }
 0x315   :  { %1482 = vmatprep.mubr.msk.f32.mxu0 %vm190_vm1, %v713_v38 }
 0x316   :  { %1483 = vmatmul.mubr.msk.f32.vlgmr.msra.gmra.mxu0 %vm190_vm1, %v714_v35 }
 0x317   :  { %1500 = vmatpush3.msra.mxu0 %v1619_v20 }
 0x318   :  { %1501 = vmatprep.subr.mxu0 %v1625_v21 }
 0x319   :  { %1502 = vmatpush3.msra.mxu0 %v1625_v21  ;;  %v805_v21 = vpop.permute.xlu0 %804 }
 0x31a   :  { %1503 = vmatprep.subr.mxu0 %v1631_v22 }
 0x31b   :  { %1504 = vmatpush3.msra.mxu0 %v1631_v22  ;;  %v1047_v22 = vpop.permute.xlu1 %1046 }
 0x31c   :  { %1505 = vmatprep.subr.mxu0 %v1640_v23 }
 0x31d   :  { %1506 = vmatpush3.msra.mxu0 %v1640_v23  ;;  %v1049_v41 = vpop.permute.xlu0 %1048 }
 0x31e   :  { %1527 = vmatprep.subr.mxu0 %v1546_v19 }
 0x31f   :  { %v1139_v51 = vpop.permute.xlu1 %1138 }
 0x321   :  { %v1134_v55 = vpop.permute.xlu0 %1133 }
 0x323   :  { %v1171_v62 = vpop.permute.xlu1 %1170 }
 0x325   :  { %v1166_v0 = vpop.permute.xlu0 %1165 }
 0x327   :  { %v1161_v2 = vpop.permute.xlu1 %1160 }
 0x329   :  { %v1156_v7 = vpop.permute.xlu0 %1155 }
 0x32b   :  { %v1279_v11 = vpop.permute.xlu1 %1278 }
 0x3d6   :  { %v1484_v39 = vpop.f32.mrf.mxu0 }
 0x3d7   :  { %1485 = vmatprep.subr.mxu1 %v1484_v39 }
 0x3d8   :  { %v791_v20 = vpop.f32.mrf.mxu0  ;;  %1486 = vmatpush3.msra.mxu1 %v1484_v39 }
 0x3d9   :  { %1487 = vmatprep.subr.mxu1 %v791_v20  ;;  %1507 = vmatprep.mubr.msk.f32.mxu0 %vm190_vm1, %v791_v20 }
 0x3da   :  { %1488 = vmatpush3.msra.mxu1 %v791_v20  ;;  %1508 = vmatmul.mubr.msk.f32.vlgmr.msra.gmra.mxu0 %vm190_vm1, %v1484_v39 }
 0x3db   :  { %1492 = vmatprep.subr.mxu1 %v714_v35  ;;  %1490 = vmatmul.mubr.msk.f32.vlgmr.msra.gmra.mxu1 %vm806_vm10, %v805_v21 }
 0x3dc   :  { %1493 = vmatpush3.msra.mxu1 %v714_v35  ;;  %1496 = vmatprep.mubr.msk.f32.mxu1 %vm806_vm10, %v1752_v3 }
 0x3dd   :  { %1494 = vmatprep.subr.mxu1 %v713_v38  ;;  %1535 = vmatprep.mubr.msk.f32.mxu0 %vm1547_vm0, %v1546_v19 }
 0x3de   :  { %1495 = vmatpush3.msra.mxu1 %v713_v38 }
 0x3df   :  { %1497 = vmatmul.mubr.msk.f32.vlgmr.msra.gmra.mxu1 %vm806_vm10, %v1757_v4 }
 0x3e0   :  { %1514 = vmatprep.mubr.msk.f32.mxu1 %vm806_vm10, %v1047_v22 }
 0x49a   :  { %v1509_v23 = vpop.f32.mrf.mxu0 }
 0x49b   :  { %1510 = vmatprep.subr.mxu1 %v1509_v23  ;;  %v1491_v43 = vpop.f32.mrf.mxu1 }
 0x49c   :  { %v1037_v40 = vpop.f32.mrf.mxu0  ;;  %1511 = vmatpush3.msra.mxu1 %v1509_v23 }
 0x49d   :  { %1512 = vmatprep.subr.mxu1 %v1037_v40  ;;  %v877_v44 = vpop.f32.mrf.mxu1 }
 0x49e   :  { %1513 = vmatpush3.msra.mxu1 %v1037_v40 }
 0x49f   :  { %1515 = vmatmul.mubr.msk.f32.vlgmr.msra.gmra.mxu1 %vm806_vm10, %v1049_v41  ;;  %v1498_v45 = vpop.f32.mrf.mxu1 }
 0x4a0   :  { %1521 = vmatprep.mubr.msk.f32.mxu1 %vm806_vm10, %v1145_v42  ;;  %v962_v47 = vadd.f32 %v1498_v45, %v1491_v43 }
 0x4a1   :  { %v956_v46 = vpop.f32.mrf.mxu1 }
 0x4a2   :  { %v957_v49 = vadd.f32 %v956_v46, %v877_v44 }
 0x55f   :  { %v1516_v48 = vpop.f32.mrf.mxu1 }
 0x560   :  { %v1130_v50 = vadd.f32 %v1516_v48, %v962_v47 }
 0x561   :  { %v1120_v52 = vpop.f32.mrf.mxu1 }
 0x562   :  { %v1142_v53 = vadd.f32 %v1139_v51, %v1130_v50  ;;  %v1129_v54 = vadd.f32 %v1120_v52, %v957_v49 }
 0x564   :  { %v1144_v56 = vmax.f32 %v1142_v53, 0.0  ;;  %v1141_v57 = vadd.f32 %v1134_v55, %v1129_v54 }
 0x566   :  { %v1143_v58 = vmax.f32 %v1141_v57, 0.0  ;;  %1517 = vmatprep.subr.mxu1 %v1144_v56 }
 0x567   :  { %1518 = vmatpush3.msra.mxu1 %v1144_v56 }
 0x568   :  { %1519 = vmatprep.subr.mxu1 %v1143_v58 }
 0x569   :  { %1520 = vmatpush3.msra.mxu1 %v1143_v58 }
 0x56a   :  { %1522 = vmatmul.mubr.msk.f32.vlgmr.msra.gmra.mxu1 %vm806_vm10, %v1146_v59 }
 0x56b   :  { %1524 = vmatprep.mubr.msk.f32.mxu1 %vm806_vm10, %v1147_v60 }
 0x56e   :  { %1525 = vmatmul.mubr.msk.f32.gmra.mxu1 %vm806_vm10, %v1148_v61 }
 0x62a   :  { %v1523_v63 = vpop.f32.mrf.mxu1 }
 0x62b   :  { %v1257_v4 = vadd.f32 %v1523_v63, %v1161_v2 }
 0x62c   :  { %v1251_v24 = vpop.f32.mrf.mxu1 }
 0x62d   :  { %v1252_v8 = vadd.f32 %v1251_v24, %v1156_v7  ;;  %v1271_v34 = vmax.f32 %v1257_v4, 0.0 }
 0x62e   :  { %v1526_v25 = vpop.f32.mrf.mxu1 }
 0x62f   :  { %v1267_v1 = vadd.f32 %v1526_v25, %v1171_v62  ;;  %v1270_v37 = vmax.f32 %v1252_v8, 0.0 }
 0x630   :  { %v1261_v3 = vpop.f32.mrf.mxu1 }
 0x631   :  { %v1273_v5 = vmax.f32 %v1267_v1, 0.0  ;;  %v1262_v6 = vadd.f32 %v1261_v3, %v1166_v0 }
 0x633   :  { %v1272_v9 = vmax.f32 %v1262_v6, 0.0  ;;  %1528 = vmatpush3.msra.mxu0 %v1273_v5 }
 0x634   :  { %1529 = vmatprep.subr.mxu0 %v1546_v19 }
 0x635   :  { %1530 = vmatpush3.msra.mxu0 %v1272_v9 }
 0x636   :  { %1531 = vmatprep.subr.mxu0 %v1546_v19 }
 0x637   :  { %1532 = vmatpush3.msra.mxu0 %v1271_v34 }
 0x638   :  { %1533 = vmatprep.subr.mxu0 %v1546_v19 }
 0x639   :  { %1534 = vmatpush3.msra.mxu0 %v1270_v37 }
 0x63a   :  { %1536 = vmatmul.mubr.msk.f32.vlgmr.msra.gmra.mxu0 %vm190_vm1, %v1274_v10 }
 0x6fa   :  { %v1350_v12 = vpop.f32.mrf.mxu0 }
 0x6fb   :  { %v1351_v13 = vadd.f32 %v1350_v12, %v1279_v11 }
 0x6fc   :  { %v1537_v14 = vpop.f32.mrf.mxu0 }
 0x6fd   :  { %1355 = vst.msk [vmem:[%s1855_s11] sm:$0xf] %vm1354_vm11, %v1351_v13 }

</bundles_post_ra>
